<compile_context>
chip_gen: v7x
topology: tpu7x:2x2x1
jax: 0.10.0
libtpu: 0.0.40
codegen_flags: <defaults>
</compile_context>

<pallas_src>
import jax
import jax.numpy as jnp
from jax import lax
from jax.experimental import pallas as pl
from jax.experimental.pallas import tpu as pltpu

EPS = 1e-12  # matches torch.nn.functional.normalize default eps


def netvlad_kernel(x_ref, w_ref, b_ref, c_ref, o_ref):
    # x_ref: (B, D, M)  native channels-first feature block (f32 or bf16)
    # w_ref: (K, D)     1x1 conv weight (= 2*alpha*centroids), storage dtype
    # b_ref: (K, 1)     1x1 conv bias (= -alpha*||centroids||), f32
    # c_ref: (K, D)     centroids, f32
    # o_ref: (B, K, D)  intra+global L2-normalized VLAD descriptors, f32
    B, D, M = x_ref.shape
    K = w_ref.shape[0]

    x = x_ref[...]                                        # keep storage dtype for the MXU
    w = jnp.broadcast_to(w_ref[...], (B, K, D))           # tiny; B is small by construction
    bias = b_ref[...]                                      # (K, 1) f32
    c = c_ref[...]                                         # (K, D) f32

    # ---- soft assignment: MXU-native per-sample (K, D) @ (D, M) ----
    logits = lax.dot_general(
        w, x, (((2,), (1,)), ((0,), (0,))),
        preferred_element_type=jnp.float32)                # (B, K, M)
    logits = logits + bias[None, :, :]

    # softmax over K (sublane reduce); exp on the EUP
    logits = logits - jnp.max(logits, axis=1, keepdims=True)
    e = jnp.exp(logits)
    s = jnp.sum(e, axis=1, keepdims=True)                  # (B, 1, M)
    r = pl.reciprocal(s, approx=True)                      # EUP approx reciprocal
    r = r * (2.0 - s * r)                                  # one Newton step -> f32 accuracy
    a = e * r                                              # (B, K, M) f32

    # per-cluster assignment mass: lane reduce over M (no x copy / concat)
    mass = jnp.sum(a, axis=-1, keepdims=True)              # (B, K, 1)

    # ---- aggregation: contract over M (flash-attention q@k^T form) ----
    agg = lax.dot_general(
        a.astype(x.dtype), x, (((2,), (2,)), ((0,), (0,))),
        preferred_element_type=jnp.float32)                # (B, K, D)

    vlad = agg - mass * c[None, :, :]                       # (B, K, D)

    # intra-normalize over D (per cluster); rsqrt keeps divides off the VALU
    ss = jnp.sum(vlad * vlad, axis=-1, keepdims=True)
    vlad = vlad * lax.rsqrt(jnp.maximum(ss, EPS * EPS))

    # global L2 normalize over (K, D); wrapper reshape to (N, K*D) is free
    gss = jnp.sum(jnp.sum(vlad * vlad, axis=-1, keepdims=True),
                  axis=-2, keepdims=True)                   # (B, 1, 1)
    vlad = vlad * lax.rsqrt(jnp.maximum(gss, EPS * EPS))

    o_ref[...] = vlad.astype(o_ref.dtype)


def _choose_sample_block(n, m, d, k, itemsize, *,
                         x_tile_target_bytes=2 << 20, min_grid=8):
    """Samples per grid step.

    Targets an x tile of ~1-4 MiB (the tiled-copy curve is already ~85% of HBM
    roofline at ~0.5-1 MiB tiles) and a grid of >= min_grid steps — even when
    possible so the "parallel" axis splits evenly across v7x's 2 TensorCores —
    instead of two giant steps with no DMA/compute overlap.
    """
    per_sample_x = m * d * itemsize
    cap = max(1, x_tile_target_bytes // max(per_sample_x, 1))
    cap = min(cap, max(1, n // min(min_grid, n)))
    divisors = [b for b in range(1, n + 1) if n % b == 0 and b <= cap]
    even_grid = [b for b in divisors if (n // b) % 2 == 0]
    return max(even_grid) if even_grid else max(divisors)


def _vmem_estimate(b, m, d, k, itemsize):
    """Conservative per-step VMEM bytes: double-buffered x and output blocks,
    the (small) parameter blocks, and the in-kernel f32 temporaries
    (logits / e / a / a-cast / agg / vlad / reductions)."""
    x_block = b * d * m * itemsize
    out_block = b * k * d * 4
    params = 2 * k * d * 4 + 4 * k + k * d * itemsize
    temps = (4 * b * k * m * 4 + b * k * m * itemsize          # logits, e, a, s/r, a_mx
             + 3 * b * k * d * 4 + b * k * d * itemsize)        # agg, vlad, broadcast w
    est = 2 * (x_block + out_block) + 2 * params + temps
    # 2x headroom, clamped so it is safe on every generation (v7x scoped 32 MiB).
    return int(min(max(2 * est, 4 << 20), 32 << 20))


def netvlad_forward(x_nchw, centroids, alpha, *,
                    sample_block=None, compute_dtype=None):
    """x_nchw: (N, D, H, W).  Returns (N, K*D) float32.

    compute_dtype=jnp.bfloat16 feeds bf16 operands to the MXU (recommended on
    v6e/v7x; ideally the producer already emits bf16 so no cast pass is
    needed).  Softmax / normalization math stays f32 either way.
    """
    N, D, H, W = x_nchw.shape
    K = centroids.shape[0]
    M = H * W

    # Zero-copy reshape — x stays in its native NCHW layout (no transpose pass).
    x = x_nchw.reshape(N, D, M)
    if compute_dtype is not None and x.dtype != compute_dtype:
        x = x.astype(compute_dtype)
    itemsize = jnp.dtype(x.dtype).itemsize

    B = sample_block if sample_block is not None else _choose_sample_block(
        N, M, D, K, itemsize)
    assert N % B == 0
    G = N // B

    w = (2.0 * alpha * centroids).astype(x.dtype)                    # (K, D)
    bias = (-alpha * jnp.linalg.norm(centroids, axis=1))[:, None]    # (K, 1) f32
    bias = bias.astype(jnp.float32)
    c = centroids.astype(jnp.float32)                                # (K, D)

    out = pl.pallas_call(
        netvlad_kernel,
        out_shape=jax.ShapeDtypeStruct((N, K, D), jnp.float32),
        grid_spec=pltpu.PrefetchScalarGridSpec(
            num_scalar_prefetch=0,
            grid=(G,),
            in_specs=[
                pl.BlockSpec((B, D, M), lambda g: (g, 0, 0)),
                pl.BlockSpec((K, D), lambda g: (0, 0)),
                pl.BlockSpec((K, 1), lambda g: (0, 0)),
                pl.BlockSpec((K, D), lambda g: (0, 0)),
            ],
            out_specs=pl.BlockSpec((B, K, D), lambda g: (g, 0, 0)),
        ),
        compiler_params=pltpu.CompilerParams(
            dimension_semantics=("parallel",),
            vmem_limit_bytes=_vmem_estimate(B, M, D, K, itemsize)),
    )(x, w, bias, c)

    # Row-major (K, D) -> K*D flatten: zero-copy, matches torch .view(N, -1).
    return out.reshape(N, K * D)


def netvlad_reference(x_nchw, centroids, alpha):
    """Pure-JAX reference matching the PyTorch forward exactly."""
    N, D, H, W = x_nchw.shape
    K = centroids.shape[0]
    M = H * W
    w = 2.0 * alpha * centroids                                  # (K, D)
    b = -alpha * jnp.linalg.norm(centroids, axis=1)              # (K,)
    x_flat = x_nchw.reshape(N, D, M)                             # (N, D, M)
    logits = jnp.einsum("kd,ndm->nkm", w, x_flat) + b[None, :, None]
    a = jax.nn.softmax(logits, axis=1)                           # (N, K, M)
    residual = x_flat[:, None, :, :] - centroids[None, :, :, None]
    vlad = jnp.sum(residual * a[:, :, None, :], axis=-1)         # (N, K, D)
    vlad = vlad / jnp.maximum(
        jnp.linalg.norm(vlad, axis=2, keepdims=True), EPS)
    vlad = vlad.reshape(N, K * D)
    vlad = vlad / jnp.maximum(
        jnp.linalg.norm(vlad, axis=1, keepdims=True), EPS)
    return vlad


if __name__ == "__main__":
    key = jax.random.PRNGKey(0)
    N, D, H, W = 2, 16, 8, 8     # small shapes: batch=2, channels=16, spatial=8x8
    K = 8                        # number of clusters
    alpha = 1.0

    kx, kc = jax.random.split(key)
    x = jax.random.normal(kx, (N, D, H, W), dtype=jnp.float32)
    centroids = jax.random.uniform(kc, (K, D), dtype=jnp.float32)  # torch.rand analogue

    out = netvlad_forward(x, centroids, alpha)
    out = jax.block_until_ready(out)

    ref = netvlad_reference(x, centroids, alpha)
    assert out.shape == (N, K * D)
    # tolerance accounts for the EUP approx-reciprocal (+Newton) softmax path
    assert jnp.allclose(out, ref, atol=1e-4, rtol=1e-4), "mismatch vs reference"

    print("KERNEL_OK")
</pallas_src>

<mosaic_0001>
module attributes {stable_mosaic.version = 11 : i64} {
  func.func @netvlad_kernel(%arg0: i32, %arg1: memref<1x16x64xf32, #tpu.memory_space<vmem>>, %arg2: memref<8x16xf32, #tpu.memory_space<vmem>>, %arg3: memref<8x1xf32, #tpu.memory_space<vmem>>, %arg4: memref<8x16xf32, #tpu.memory_space<vmem>>, %arg5: memref<1x8x16xf32, #tpu.memory_space<vmem>>) attributes {dimension_semantics = [#tpu.dimension_semantics<parallel>], iteration_bounds = array<i64: 2>, scalar_prefetch = 0 : i64, scratch_operands = 0 : i64, tpu.core_type = #tpu.core_type<tc>, window_params = [{transform_indices = @transform_0, window_bounds = array<i64: 1, 16, 64>}, {pipeline_mode = #tpu.pipeline_mode<synchronous>, transform_indices = @transform_1, window_bounds = array<i64: 8, 16>}, {pipeline_mode = #tpu.pipeline_mode<synchronous>, transform_indices = @transform_2, window_bounds = array<i64: 8, 1>}, {pipeline_mode = #tpu.pipeline_mode<synchronous>, transform_indices = @transform_3, window_bounds = array<i64: 8, 16>}, {transform_indices = @transform_4, window_bounds = array<i64: 1, 8, 16>}]} {
    %c0 = arith.constant 0 : index
    %c0_0 = arith.constant 0 : index
    %c0_1 = arith.constant 0 : index
    %0 = vector.load %arg1[%c0, %c0_0, %c0_1] : memref<1x16x64xf32, #tpu.memory_space<vmem>>, vector<1x16x64xf32>
    %c0_2 = arith.constant 0 : index
    %c0_3 = arith.constant 0 : index
    %1 = vector.load %arg2[%c0_2, %c0_3] : memref<8x16xf32, #tpu.memory_space<vmem>>, vector<8x16xf32>
    %2 = vector.shape_cast %1 : vector<8x16xf32> to vector<1x8x16xf32>
    %c0_4 = arith.constant 0 : index
    %c0_5 = arith.constant 0 : index
    %3 = vector.load %arg3[%c0_4, %c0_5] : memref<8x1xf32, #tpu.memory_space<vmem>>, vector<8x1xf32>
    %c0_6 = arith.constant 0 : index
    %c0_7 = arith.constant 0 : index
    %4 = vector.load %arg4[%c0_6, %c0_7] : memref<8x16xf32, #tpu.memory_space<vmem>>, vector<8x16xf32>
    %cst = arith.constant dense<0.000000e+00> : vector<1x8x64xf32>
    %5 = tpu.matmul %2, %0, %cst {dimension_numbers = #tpu.dot_dimension_numbers<[2], [1], [1], [2], [0, 0, 0, 1, 1, 2], [0], [0]>} : vector<1x8x16xf32>, vector<1x16x64xf32>, vector<1x8x64xf32> -> vector<1x8x64xf32>
    %6 = vector.shape_cast %3 : vector<8x1xf32> to vector<1x8x1xf32>
    %7 = vector.broadcast %6 : vector<1x8x1xf32> to vector<1x8x64xf32>
    %8 = arith.addf %5, %7 : vector<1x8x64xf32>
    %cst_8 = arith.constant dense<0xFF800000> : vector<1x64xf32>
    %9 = vector.multi_reduction <maximumf>, %8, %cst_8 [1] : vector<1x8x64xf32> to vector<1x64xf32>
    %10 = vector.shape_cast %9 : vector<1x64xf32> to vector<1x1x64xf32>
    %11 = vector.broadcast %10 : vector<1x1x64xf32> to vector<1x8x64xf32>
    %12 = arith.subf %8, %11 : vector<1x8x64xf32>
    %13 = math.exp %12 : vector<1x8x64xf32>
    %cst_9 = arith.constant dense<0.000000e+00> : vector<1x64xf32>
    %14 = vector.multi_reduction <add>, %13, %cst_9 [1] : vector<1x8x64xf32> to vector<1x64xf32>
    %15 = vector.shape_cast %14 : vector<1x64xf32> to vector<1x1x64xf32>
    %16 = tpu.reciprocal %15 {approx = true} : vector<1x1x64xf32> -> vector<1x1x64xf32>
    %17 = arith.mulf %15, %16 : vector<1x1x64xf32>
    %cst_10 = arith.constant 2.000000e+00 : f32
    %18 = vector.broadcast %cst_10 : f32 to vector<1x1x64xf32>
    %19 = arith.subf %18, %17 : vector<1x1x64xf32>
    %20 = arith.mulf %16, %19 : vector<1x1x64xf32>
    %21 = vector.broadcast %20 : vector<1x1x64xf32> to vector<1x8x64xf32>
    %22 = arith.mulf %13, %21 : vector<1x8x64xf32>
    %cst_11 = arith.constant dense<0.000000e+00> : vector<1x8xf32>
    %23 = vector.multi_reduction <add>, %22, %cst_11 [2] : vector<1x8x64xf32> to vector<1x8xf32>
    %24 = vector.shape_cast %23 : vector<1x8xf32> to vector<1x8x1xf32>
    %cst_12 = arith.constant dense<0.000000e+00> : vector<1x8x16xf32>
    %25 = tpu.matmul %22, %0, %cst_12 {dimension_numbers = #tpu.dot_dimension_numbers<[2], [2], [1], [1], [0, 0, 0, 1, 1, 1], [0], [0]>} : vector<1x8x64xf32>, vector<1x16x64xf32>, vector<1x8x16xf32> -> vector<1x8x16xf32>
    %26 = vector.shape_cast %4 : vector<8x16xf32> to vector<1x8x16xf32>
    %27 = vector.broadcast %24 : vector<1x8x1xf32> to vector<1x8x16xf32>
    %28 = arith.mulf %27, %26 : vector<1x8x16xf32>
    %29 = arith.subf %25, %28 : vector<1x8x16xf32>
    %30 = arith.mulf %29, %29 : vector<1x8x16xf32>
    %cst_13 = arith.constant dense<0.000000e+00> : vector<1x8xf32>
    %31 = vector.multi_reduction <add>, %30, %cst_13 [2] : vector<1x8x16xf32> to vector<1x8xf32>
    %32 = vector.shape_cast %31 : vector<1x8xf32> to vector<1x8x1xf32>
    %cst_14 = arith.constant 1.000000e-24 : f32
    %33 = vector.broadcast %cst_14 : f32 to vector<1x8x1xf32>
    %34 = arith.maximumf %32, %33 : vector<1x8x1xf32>
    %35 = math.rsqrt %34 : vector<1x8x1xf32>
    %36 = vector.broadcast %35 : vector<1x8x1xf32> to vector<1x8x16xf32>
    %37 = arith.mulf %29, %36 : vector<1x8x16xf32>
    %38 = arith.mulf %37, %37 : vector<1x8x16xf32>
    %cst_15 = arith.constant dense<0.000000e+00> : vector<1x8xf32>
    %39 = vector.multi_reduction <add>, %38, %cst_15 [2] : vector<1x8x16xf32> to vector<1x8xf32>
    %40 = vector.shape_cast %39 : vector<1x8xf32> to vector<1x8x1xf32>
    %cst_16 = arith.constant dense<0.000000e+00> : vector<1x1xf32>
    %41 = vector.multi_reduction <add>, %40, %cst_16 [1] : vector<1x8x1xf32> to vector<1x1xf32>
    %42 = vector.shape_cast %41 : vector<1x1xf32> to vector<1x1x1xf32>
    %cst_17 = arith.constant 1.000000e-24 : f32
    %43 = vector.broadcast %cst_17 : f32 to vector<1x1x1xf32>
    %44 = arith.maximumf %42, %43 : vector<1x1x1xf32>
    %45 = math.rsqrt %44 : vector<1x1x1xf32>
    %46 = vector.broadcast %45 : vector<1x1x1xf32> to vector<1x8x16xf32>
    %47 = arith.mulf %37, %46 : vector<1x8x16xf32>
    %c0_18 = arith.constant 0 : index
    %c0_19 = arith.constant 0 : index
    %c0_20 = arith.constant 0 : index
    %48 = vector.load %arg5[%c0_18, %c0_19, %c0_20] : memref<1x8x16xf32, #tpu.memory_space<vmem>>, vector<1x8x16xf32>
    tpu.vector_store %arg5[%c0_18, %c0_19, %c0_20], %47 {strides = array<i32>} : memref<1x8x16xf32, #tpu.memory_space<vmem>>, vector<1x8x16xf32>,
    return
  }
  func.func @transform_0(%arg0: i32) -> (i32, i32, i32) {
    %c0_i32 = arith.constant 0 : i32
    %c0_i32_0 = arith.constant 0 : i32
    %c0_i32_1 = arith.constant 0 : i32
    return %arg0, %c0_i32, %c0_i32_0 : i32, i32, i32
  }
  func.func @transform_1(%arg0: i32) -> (i32, i32) {
    %c0_i32 = arith.constant 0 : i32
    %c0_i32_0 = arith.constant 0 : i32
    %c0_i32_1 = arith.constant 0 : i32
    return %c0_i32, %c0_i32_0 : i32, i32
  }
  func.func @transform_2(%arg0: i32) -> (i32, i32) {
    %c0_i32 = arith.constant 0 : i32
    %c0_i32_0 = arith.constant 0 : i32
    %c0_i32_1 = arith.constant 0 : i32
    return %c0_i32, %c0_i32_0 : i32, i32
  }
  func.func @transform_3(%arg0: i32) -> (i32, i32) {
    %c0_i32 = arith.constant 0 : i32
    %c0_i32_0 = arith.constant 0 : i32
    %c0_i32_1 = arith.constant 0 : i32
    return %c0_i32, %c0_i32_0 : i32, i32
  }
  func.func @transform_4(%arg0: i32) -> (i32, i32, i32) {
    %c0_i32 = arith.constant 0 : i32
    %c0_i32_0 = arith.constant 0 : i32
    %c0_i32_1 = arith.constant 0 : i32
    return %arg0, %c0_i32, %c0_i32_0 : i32, i32, i32
  }
}

</mosaic_0001>

<bundles_post_ra>
// kernel: tpu_custom_call.1
= control target key start
LH: loop header
LB: loop body
LE: loop exit
PB: predicated region body
PF: predicated region fallthrough
CT: control target
= control target key end

     0   :  { %9 = vsyncpa [#allocation3], 0  ;;  %s929_s0 = inlined_call_operand.hbm [shape: f32[2,16,64], index: 0, kind: input, shape index: {}]   ;;  %s930_s1 = inlined_call_operand.vmem [shape: f32[8,16], index: 1, kind: input, shape index: {}]   ;;  %s931_s2 = inlined_call_operand.vmem [shape: f32[8,1], index: 2, kind: input, shape index: {}]   ;;  %s932_s3 = inlined_call_operand.vmem [shape: f32[8,16], index: 3, kind: input, shape index: {}]   ;;  %s933_s4 = inlined_call_operand.hbm [shape: f32[2,8,16], index: 4, kind: output, shape index: {}]  }
   0x1   :  { %11 = vsyncpa [#allocation3 + $0x1], 0 }
   0x2   :  { %12 = vsyncpa [#allocation4], 0 }
   0x3   :  { %14 = vsyncpa [#allocation4 + $0x1], 0  ;;  %s749_s15 = smov 0   ;;  %s751_s16 = smov 0  }
   0x4   :  { %s753_s17 = smov 0   ;;  %s755_s18 = smov 0  }
   0x5 LB: > { %s770_s19 = sadd.s32 4294967295, %s714_s18   ;;  %s512_s20 = sadd.s32 4294967294, %s714_s18   ;;  %s714_s18 = sphi %s755_s18, %s946_s18   ;;  %s710_s17 = sphi %s753_s17, %s945_s17   ;;  %s706_s16 = sphi %s751_s16, %s944_s16   ;;  %s702_s15 = sphi %s749_s15, %s943_s15  }
   0x6   : > { %s774_s21 = sadd.s32 1, %s714_s18   ;;  %s27_s22 = sadd.s32 1, %s710_s17 }
   0x7   : > { %s24_s23 = ssub.s32 %s714_s18, %s774_s21  ;;  %p34_p0 = scmp.ne.s32.totalorder %s710_s17, %s706_s16 }
   0x8   : > { %p25_p1 = scmp.eq.s32.totalorder %s24_s23, 0  ;;  %p35_p2 = scmp.eq.s32.totalorder %s714_s18, 0 }
   0x9   : > { %p40_p3 = scmp.ne.s32.totalorder %s706_s16, %s702_s15  ;;  %p41_p4 = scmp.eq.s32.totalorder %s770_s19, 0 }
   0xa   : > { %s786_s24 = scalar_select %p25_p1, %s710_s17, %s27_s22  }
   0xb   : > { %p788_p5 = por %p35_p2, %p34_p0  ;;  %p792_p6 = por %p41_p4, %p40_p3 }
   0xc   : > { %p127_p7 = scmp.eq.s32.totalorder %s770_s19, 1  ;;  %p133_p8 = scmp.eq.s32.totalorder %s512_s20, 1 }
   0xd   : > { %p569_p10 = scmp.lt.s32.totalorder %s714_s18, 2  ;;  %s162_s29 = sand.u32 1, %s710_s17  }
   0xe   : > { %p799_p11 = por %p127_p7, %p34_p0  ;;  %p803_p12 = por %p133_p8, %p40_p3 }
   0xf   : > { %s529_s30 = sshll.u32 %s714_s18, 8  ;;  %s515_s5 = sshll.u32 %s162_s29, 4 }
  0x10   : > { %s937_s27 = scalar_select %p799_p11, 1, 0 }
  0x11   : > { %s938_s28 = scalar_select %p803_p12, 1, 0 }
  0x12   : > { %s812_s8 = scalar_lea.hbm %s929_s0, %s529_s30  ;;  %s166_s9 = scalar_lea.vmem [#allocation2], %s515_s5 }
  0x13   : > { %s173_s10 = sshll.u32 %s166_s9, 4  ;;  %p816_p13 = pnand %p569_p10, %p788_p5  ;;  %s820_s10 = int_to_ptr.vmem [resolvable:$true] %s173_s10 }
  0x14   : > { %s822_s12 = scalar_lea.sflag [#allocation3], %s162_s29  ;;  %s618_s13 = scalar_lea.hbm %s812_s8, 256 }
  0x15   : > { %p619_p0 = scmp.ne.s32.totalorder %s812_s8, %s618_s13  ;;  %p620_p1 = pneg %p816_p13 }
  0x16   : > { %s623_s22 = scalar_lea.hbm %s929_s0, 512  ;;  %p624_p4 = scmp.lt.u32.totalorder %s812_s8, %s929_s0 }
  0x17   : > { %p621_p2 = pnand %p620_p1, %p619_p0  ;;  %p625_p5 = scmp.lt.u32.totalorder %s623_s22, %s618_s13 }
  0x18   : > { %p627_p8 = scmp.lt.u32.totalorder %s618_s13, %s812_s8 }
  0x19   : > { %p622_p3 = pneg %p621_p2  ;;  %p626_p7 = por %p625_p5, %p624_p4 }
  0x1b   : > { %p628_p10 = por %p627_p8, %p626_p7 }
  0x1d   : > { %p629_p9 = pnand %p628_p10, %p622_p3 }
  0x1f   : > { %632 = shalt.err (!%p629_p9)
}
  0x20   : > { %s633_s29 = scalar_lea.vmem %s820_s10, 256  ;;  %s716_s30 = smov [#allocation2]  }
  0x21   : > { %p634_p0 = scmp.ne.s32.totalorder %s820_s10, %s633_s29  ;;  %s638_s5 = sshll.u32 %s716_s30, 4  ;;  %s639_s5 = int_to_ptr.vmem [resolvable:$false] %s638_s5 }
  0x22   : > { %s640_s6 = scalar_lea.vmem %s639_s5, 512  ;;  %p641_p11 = scmp.lt.s32.totalorder %s820_s10, %s639_s5 }
  0x23   : > { %p636_p2 = pnand %p634_p0, %p620_p1  ;;  %p642_p4 = scmp.lt.s32.totalorder %s640_s6, %s633_s29 }
  0x25   : > { %p637_p12 = pneg %p636_p2  ;;  %p643_p5 = por %p642_p4, %p641_p11 }
  0x27   : > { %p644_p7 = pnand %p643_p5, %p637_p12 }
  0x29   : > { %647 = shalt.err (!%p644_p7)
}
  0x2a   : > { %s717_s7 = smov 128   ;;  %s718_s9 = smov 8  }
  0x2b   : > { %564 = dma.hbm_to_vmem [thread:$0]  (!%p816_p13), %s812_s8, 256, %s820_s10, %s822_s12, %s717_s7, %s717_s7, %s718_s9  }
  0x2c   : > { %p518_p9 = scmp.ge.s32.totalorder %s714_s18, 1  ;;  %p181_p1 = scmp.lt.s32.totalorder %s714_s18, 3 }
  0x2e   : > { %p182_p3 = pnand %p518_p9, %p181_p1 }
  0x2f   : > { %s853_s13 = sand.u32 (!%p182_p3), 1, %s706_s16  }
  0x30   : > { %185 = sbr.rel (%p182_p3) target bundleno = 897 (0x381), region = 36  ;;  %s519_s14 = sshll.u32 (!%p182_p3), %s853_s13, 4 }
  0x31   : > { %s188_s20 = scalar_lea.sflag (!%p182_p3), [#allocation3], %s853_s13  ;;  %s191_s22 = scalar_lea.vmem (!%p182_p3), [#allocation2], %s519_s14 }
  0x37   : > { %693 = dma.done.wait (%p792_p6), %s188_s20, 256  }
  0x38   : > { %695 = vsyncadd (%p792_p6), %s188_s20, 4294967040  ;;  %v719_v0 = vmov 0.0|0.0   ;;  %vm720_vm0 = vmmov 0   ;;  %v721_v1 = vmov 0.0   ;;  %v722_v2 = vmov 0   ;;  %v216_v3 = vld [vmem:[%s191_s22] sm:$0xff] }
  0x39   : > { %550 = vmatprep.subr.bf16.mxu0 %v719_v0  ;;  %540 = vmatprep.mubr.msk.f32.mxu0 %vm720_vm0, %v721_v1  ;;  %v217_v4 = vld [vmem:[%s191_s22 + $0x8] sm:$0xff]  ;;  %v219_v6 = vld [vmem:[%s931_s2] sm:$0xff]  ;;  %vm226_vm1 = vcmask 130048   ;;  %vm300_vm2 = vcmask 523264   ;;  %s520_s25 = sshll.u32 %s853_s13, 3  ;;  %s526_s29 = sshll.u32 %s770_s19, 7 }
  0x3a   : > { %609 = vset.pattern.permute.xlu0 %v722_v2  ;;  %553 = vmatprep.subr.bf16.mxu1 %v719_v0  ;;  %v551_v5 = vpack.c.bf16 %v217_v4, %v216_v3  ;;  %v218_v7 = vld [vmem:[%s930_s1] sm:$0xff]  ;;  %vm555_vm3 = vmpackc.low %vm300_vm2, %vm300_vm2  ;;  %s215_s30 = scalar_lea.vmem [#allocation5], %s520_s25  ;;  %s884_s9 = scalar_lea.hbm %s933_s4, %s526_s29 }
  0x3b   : > { %547 = vmatprep.mubr.msk.f32.mxu1 %vm720_vm0, %v721_v1  ;;  %223 = vperm.xlu0 %609, %v219_v6   ;;  %v220_v35 = vld [vmem:[%s932_s3] sm:$0xff]  ;;  %s442_s5 = sshll.u32 %s215_s30, 4  ;;  %s429_s14 = scalar_lea.sflag [#allocation4], %s853_s13  ;;  %s886_s5 = int_to_ptr.vmem [resolvable:$true] %s442_s5 }
  0x3c   : > { %552 = vmatpush3.bf16.msra.mxu0 %v551_v5  ;;  %556 = vmatpush3.bf16.xpose.msk.msra.mxu1 %vm555_vm3, %v551_v5  ;;  %s648_s20 = scalar_lea.vmem %s886_s5, 128  ;;  %p940_p11 = scmp.ne.s32.totalorder %s937_s27, 0 }
  0x3d   : > { %p649_p6 = scmp.ne.s32.totalorder %s886_s5, %s648_s20  ;;  %s723_s19 = smov [#allocation5]  }
  0x3e   : > { %s652_s22 = sshll.u32 %s723_s19, 4  ;;  %s653_s22 = int_to_ptr.vmem [resolvable:$false] %s652_s22 }
  0x3f   : > { %541 = vmatmul.mubr.msk.f32.vlgmr.msra.gmra.mrb[0].mxu0 %vm226_vm1, %v218_v7  ;;  %p650_p12 = pnand %p649_p6, %p940_p11  ;;  %s654_s8 = scalar_lea.vmem %s653_s22, 256 }
  0x40   : > { %p655_p8 = scmp.lt.s32.totalorder %s886_s5, %s653_s22  ;;  %p656_p10 = scmp.lt.s32.totalorder %s654_s8, %s648_s20 }
  0x41   : > { %p651_p13 = pneg %p650_p12 }
  0x42   : > { %p657_p0 = por %p656_p10, %p655_p8 }
  0x44   : > { %p658_p2 = pnand %p657_p0, %p651_p13 }
  0xba   : > { %v224_v8 = vpop.permute.xlu0 %223 }
 0x112   : > { %v296_v9 = vpop.f32.mrb[0].mxu0 }
 0x113   : > { %v297_v10 = vadd.f32 %v296_v9, %v224_v8  ;;  %v542_v11 = vpop.f32.mrb[1].mxu0 }
 0x115   : > { %v301_v12 = vsel %vm300_vm2, %v297_v10, -inf }
 0x116   : > { %v302_v13 = vrot.slane %v301_v12, 4 }
 0x118   : > { %v303_v14 = vmax.f32 %v301_v12, %v302_v13 }
 0x11a   : > { %v304_v15 = vrot.slane %v303_v14, 2 }
 0x11c   : > { %v305_v16 = vmax.f32 %v303_v14, %v304_v15 }
 0x11e   : > { %v306_v17 = vrot.slane %v305_v16, 1 }
 0x120   : > { %v307_v18 = vmax.f32 %v305_v16, %v306_v17 }
 0x122   : > { %v308_v19 = vsub.f32 %v297_v10, %v307_v18 }
 0x124   : > { %v309_v20 = vmul.f32 1.442695, %v308_v19 }
 0x126   : > { %610 = vpow2.f32 %v309_v20 }
 0x130   : > { %v611_v21 = vpop.eup %610 }
 0x131   : > { %v311_v22 = vsel %vm300_vm2, %v611_v21, 0.0 }
 0x132   : > { %v312_v23 = vrot.slane %v311_v22, 4 }
 0x134   : > { %v313_v24 = vadd.f32 %v312_v23, %v311_v22 }
 0x136   : > { %v314_v25 = vrot.slane %v313_v24, 2 }
 0x138   : > { %v315_v26 = vadd.f32 %v314_v25, %v313_v24 }
 0x13a   : > { %v316_v27 = vrot.slane %v315_v26, 1 }
 0x13c   : > { %v317_v28 = vadd.f32 %v316_v27, %v315_v26 }
 0x13e   : > { %612 = vrcp.f32 %v317_v28 }
 0x148   : > { %v613_v29 = vpop.eup %612 }
 0x149   : > { %v319_v30 = vmul.f32 %v613_v29, %v317_v28 }
 0x14b   : > { %v320_v31 = vsub.f32 2.0, %v319_v30 }
 0x14d   : > { %v321_v32 = vmul.f32 %v613_v29, %v320_v31 }
 0x14f   : > { %v322_v33 = vmul.f32 %v611_v21, %v321_v32 }
 0x151   : > { %548 = vmatmul.mubr.msk.f32.vlgmr.msra.gmra.mrb[0].mxu1 %vm300_vm2, %v322_v33  ;;  %v323_v34 = vsel %vm300_vm2, %v322_v33, 0.0 }
 0x152   : > { %324 = vadd.xlane.f32.xlu0 %v323_v34 }
 0x1df   : > { %v325_v36 = vpop.xlane.xlu0 %324 }
 0x1e0   : > { %v405_v37 = vmul.f32 %v325_v36, %v220_v35 }
 0x224   : > { %v401_v38 = vpop.f32.mrb[0].mxu1 }
 0x225   : > { %v406_v39 = vsub.f32 %v401_v38, %v405_v37  ;;  %v549_v40 = vpop.f32.mrb[1].mxu1 }
 0x227   : > { %v407_v41 = vmul.f32 %v406_v39, %v406_v39 }
 0x229   : > { %v408_v42 = vsel %vm226_vm1, %v407_v41, 0.0 }
 0x22a   : > { %409 = vadd.xlane.f32.xlu1 %v408_v42 }
 0x2b7   : > { %v410_v43 = vpop.xlane.xlu1 %409 }
 0x2b8   : > { %v411_v44 = vmax.f32 %v410_v43, 1e-24 }
 0x2ba   : > { %614 = vrsqrt.f32 %v411_v44 }
 0x2c4   : > { %v615_v45 = vpop.eup %614 }
 0x2c5   : > { %v413_v46 = vmul.f32 %v615_v45, %v406_v39 }
 0x2c7   : > { %v414_v47 = vmul.f32 %v413_v46, %v413_v46 }
 0x2c9   : > { %v415_v48 = vsel %vm226_vm1, %v414_v47, 0.0 }
 0x2ca   : > { %416 = vadd.xlane.f32.xlu1 %v415_v48 }
 0x357   : > { %v417_v49 = vpop.xlane.xlu1 %416 }
 0x358   : > { %v418_v50 = vrot.slane %v417_v49, 4 }
 0x35a   : > { %v419_v51 = vadd.f32 %v418_v50, %v417_v49 }
 0x35c   : > { %v420_v52 = vrot.slane %v419_v51, 2 }
 0x35e   : > { %v421_v53 = vadd.f32 %v420_v52, %v419_v51 }
 0x360   : > { %v422_v54 = vrot.slane %v421_v53, 1 }
 0x362   : > { %v423_v55 = vadd.f32 %v422_v54, %v421_v53 }
 0x364   : > { %v424_v56 = vmax.f32 %v423_v55, 1e-24 }
 0x366   : > { %616 = vrsqrt.f32 %v424_v56 }
 0x370   : > { %v617_v57 = vpop.eup %616 }
 0x371   : > { %v426_v58 = vmul.f32 %v617_v57, %v413_v46 }
 0x373   : > { %427 = vst.msk [vmem:[%s215_s30] sm:$0xff] %vm226_vm1, %v426_v58 }
 0x374   : > { %661 = shalt.err (!%p658_p2)
}
 0x375   : > { %s662_s13 = scalar_lea.hbm %s884_s9, 128  ;;  %s666_s11 = scalar_lea.hbm %s933_s4, 256 }
 0x376   : > { %p663_p4 = scmp.ne.s32.totalorder %s884_s9, %s662_s13  ;;  %p667_p9 = scmp.lt.u32.totalorder %s884_s9, %s933_s4 }
 0x377   : > { %p668_p1 = scmp.lt.u32.totalorder %s666_s11, %s662_s13  ;;  %p670_p6 = scmp.lt.u32.totalorder %s662_s13, %s884_s9 }
 0x378   : > { %p664_p5 = pnand %p663_p4, %p940_p11 }
 0x379   : > { %p669_p3 = por %p668_p1, %p667_p9 }
 0x37a   : > { %p665_p7 = pneg %p664_p5 }
 0x37b   : > { %p671_p12 = por %p670_p6, %p669_p3 }
 0x37d   : > { %p672_p13 = pnand %p671_p12, %p665_p7 }
 0x37f   : > { %675 = shalt.err (!%p672_p13)
}
 0x380   : > { %559 = dma.vmem_to_hbm [thread:$0]  (%p940_p11), %s886_s5, 128, %s884_s9, %s429_s14  }
 0x381 PF: > { %s454_s25 = sand.u32 1, %s702_s15   ;;  %p941_p8 = scmp.ne.s32.totalorder %s938_s28, 0 }
 0x382   : > { %p942_p10 = scmp.ge.s32.totalorder %s714_s18, 2  ;;  %s455_s29 = scalar_lea.sflag [#allocation4], %s454_s25 }
 0x384   : > { %p566_p0 = pnand %p942_p10, %p941_p8 }
 0x386   : > { %697 = dma.done.wait (!%p566_p0), %s455_s29, 128  }
 0x387   : > { %699 = vsyncadd (!%p566_p0), %s455_s29, 4294967168  ;;  %p17_p2 = scmp.ge.s32.totalorder %s774_s21, 4   ;;  %s943_s15 = smov %s706_s16 }
 0x388   : > { %s944_s16 = smov %s710_s17  ;;  %s945_s17 = smov %s786_s24 }
 0x389   : > { %s946_s18 = smov %s774_s21  ;;  %19 = sbr.rel (!%p17_p2) target bundleno = 5 (0x5), region = 81 }
 0x390   :  { %460 = vsyncpa [#allocation3], 1 }
 0x391   :  { %462 = vsyncpa [#allocation3 + $0x1], 1 }
 0x392   :  { %463 = vsyncpa [#allocation4], 1 }
 0x393   :  { %465 = vsyncpa [#allocation4 + $0x1], 1 }

</bundles_post_ra>
